<compile_context>
chip_gen: v5e
topology: v5e:2x2
jax: 0.10.0
libtpu: 0.0.40
codegen_flags: <defaults>
</compile_context>

<pallas_src>
import functools

import jax
import jax.numpy as jnp
from jax.experimental import pallas as pl
from jax.experimental.pallas import tpu as pltpu

BN_EPS = 1e-5
_SUBLANE = 16  # bf16-native sublane multiple (also valid for f32 tiles).


def _round_up(x, m):
    return (x + m - 1) // m * m


def _vmem_limit_bytes():
    """Generation-aware VMEM budget: ~3/4 of physical capacity."""
    cap = 64 << 20  # conservative fallback = smallest known capacity (v7x)
    try:
        info = pltpu.get_tpu_info()
        cap = int(getattr(info, "vmem_capacity_bytes", cap))
    except Exception:
        pass
    return int(cap * 3 // 4)


# ----------------------------------------------------------------------------
# Kernels
# ----------------------------------------------------------------------------
def _linear_stats_kernel(x_ref, w_ref, b_ref, h_ref, stats_ref, *, n_rows, tile_m):
    """h = x @ W + b; write h tile and masked per-tile (sum, sum_sq) of h."""
    h = jnp.dot(x_ref[...].astype(w_ref.dtype), w_ref[...],
                preferred_element_type=jnp.float32) + b_ref[...]
    h_ref[...] = h
    # Mask rows past the true batch size (ragged last block reads garbage).
    rows = jax.lax.broadcasted_iota(jnp.int32, h.shape, 0) + pl.program_id(0) * tile_m
    hm = jnp.where(rows < n_rows, h, 0.0)
    s = jnp.sum(hm, axis=0, keepdims=True)
    ss = jnp.sum(hm * hm, axis=0, keepdims=True)
    stats_ref[...] = jnp.concatenate([s, ss], axis=0)[None]


def _bn_relu_linear_stats_kernel(h_ref, bn_ref, w_ref, b_ref, h_out_ref, stats_ref,
                                 *, n_rows, tile_m):
    """h_out = relu(h*scale + shift) @ W + b; plus masked per-tile stats."""
    h = jnp.maximum(h_ref[...] * bn_ref[0:1, :] + bn_ref[1:2, :], 0.0)
    h1 = jnp.dot(h.astype(w_ref.dtype), w_ref[...],
                 preferred_element_type=jnp.float32) + b_ref[...]
    h_out_ref[...] = h1
    rows = jax.lax.broadcasted_iota(jnp.int32, h1.shape, 0) + pl.program_id(0) * tile_m
    hm = jnp.where(rows < n_rows, h1, 0.0)
    s = jnp.sum(hm, axis=0, keepdims=True)
    ss = jnp.sum(hm * hm, axis=0, keepdims=True)
    stats_ref[...] = jnp.concatenate([s, ss], axis=0)[None]


def _bn_relu_mu_head_kernel(h_ref, bn_ref, w_ref, b_ref, mu_ref):
    """mu tile = clamp(exp(relu(h*scale + shift) @ W_mu + b_mu), 1e-5, 1e6)."""
    h = jnp.maximum(h_ref[...] * bn_ref[0:1, :] + bn_ref[1:2, :], 0.0)
    logits = jnp.dot(h.astype(w_ref.dtype), w_ref[...],
                     preferred_element_type=jnp.float32) + b_ref[...]
    # TODO(synk): a bf16 exp path would ~2x EUP throughput on v6e/v7x if the
    # extra rounding of the logits is acceptable (kept f32 for fidelity).
    mu_ref[...] = jnp.clip(jnp.exp(logits), 1e-5, 1e6).astype(mu_ref.dtype)


# ----------------------------------------------------------------------------
# Wrapper
# ----------------------------------------------------------------------------
def _batch_stats_to_scale_shift(partial_stats, n, gamma, beta):
    """Reduce per-tile (sum, sum_sq) into BN (scale, shift) rows, shape (2, h)."""
    s = jnp.sum(partial_stats, axis=0)            # (2, h)
    mean = s[0:1, :] / n
    var = s[1:2, :] / n - mean * mean             # biased batch variance
    scale = gamma * jax.lax.rsqrt(var + BN_EPS)
    shift = beta - mean * scale
    return jnp.concatenate([scale, shift], axis=0).astype(jnp.float32)


def dense_decoder_forward(x, params, *, matmul_dtype=jnp.bfloat16,
                          mu_dtype=jnp.float32,
                          block_m=256, block_n=1024, stage1_block_m=512):
    """DenseDecoder forward.  x: (N, input_dim) float32.  Returns (mu, var)."""
    n, in_dim = x.shape
    h0 = params["w0"].shape[1]
    h1 = params["w1"].shape[1]
    d = params["w_mu"].shape[1]
    md = jnp.dtype(matmul_dtype)
    mud = jnp.dtype(mu_dtype)
    vmem_limit = _vmem_limit_bytes()

    def cparams(dims):
        return pltpu.CompilerParams(dimension_semantics=dims,
                                    vmem_limit_bytes=vmem_limit)

    full = lambda a: pl.BlockSpec(a.shape, lambda *_: (0,) * a.ndim)

    w0 = params["w0"].astype(md)
    w1 = params["w1"].astype(md)
    w_mu = params["w_mu"].astype(md)
    b0 = params["b0"].astype(jnp.float32)
    b1 = params["b1"].astype(jnp.float32)
    b_mu = params["b_mu"].astype(jnp.float32)

    # ---- stage 1a: h0_pre = x @ W0 + b0, plus per-tile BN statistics -------
    tm1 = n if n <= stage1_block_m else _round_up(stage1_block_m, _SUBLANE)
    g1 = pl.cdiv(n, tm1)
    h0_pre, stats0 = pl.pallas_call(
        functools.partial(_linear_stats_kernel, n_rows=n, tile_m=tm1),
        out_shape=(jax.ShapeDtypeStruct((n, h0), jnp.float32),
                   jax.ShapeDtypeStruct((g1, 2, h0), jnp.float32)),
        grid=(g1,),
        in_specs=[pl.BlockSpec((tm1, in_dim), lambda i: (i, 0)),
                  full(w0), full(b0)],
        out_specs=[pl.BlockSpec((tm1, h0), lambda i: (i, 0)),
                   pl.BlockSpec((1, 2, h0), lambda i: (i, 0, 0))],
        compiler_params=cparams(("parallel",)),
    )(x, w0, b0)
    # TODO(synk): BatchNorm1d running_mean/running_var buffer updates
    # (training-time side effect) are not materialized by this forward.
    bn0 = _batch_stats_to_scale_shift(stats0, n,
                                      params["gamma0"].astype(jnp.float32),
                                      params["beta0"].astype(jnp.float32))

    # ---- stage 1b: h1_pre = relu(BN0(h0_pre)) @ W1 + b1, plus statistics ---
    h1_pre, stats1 = pl.pallas_call(
        functools.partial(_bn_relu_linear_stats_kernel, n_rows=n, tile_m=tm1),
        out_shape=(jax.ShapeDtypeStruct((n, h1), jnp.float32),
                   jax.ShapeDtypeStruct((g1, 2, h1), jnp.float32)),
        grid=(g1,),
        in_specs=[pl.BlockSpec((tm1, h0), lambda i: (i, 0)),
                  full(bn0), full(w1), full(b1)],
        out_specs=[pl.BlockSpec((tm1, h1), lambda i: (i, 0)),
                   pl.BlockSpec((1, 2, h1), lambda i: (i, 0, 0))],
        compiler_params=cparams(("parallel",)),
    )(h0_pre, bn0, w1, b1)
    bn1 = _batch_stats_to_scale_shift(stats1, n,
                                      params["gamma1"].astype(jnp.float32),
                                      params["beta1"].astype(jnp.float32))

    # ---- stage 2: fused BN1 + ReLU + dec_mu head (no pads, no slicing) -----
    usable = int(vmem_limit * 0.9)
    md_b, mu_b = md.itemsize, mud.itemsize
    block_m = max(_SUBLANE, (block_m // _SUBLANE) * _SUBLANE)

    # Keep W_mu / b_mu VMEM-resident when they fit: fetched from HBM once for
    # the whole head instead of once per batch tile.
    w_resident = (2 * h1 * d * md_b + 2 * d * 4) <= usable // 2
    tn = d if w_resident else max(128, (block_n // 128) * 128)

    # Generation-aware batch tile: double-buffered h/out tiles + resident W
    # must fit the VMEM budget (v7x's smaller VMEM yields a smaller tile).
    fixed = 2 * h1 * tn * md_b + 2 * tn * 4 + 2 * 2 * h1 * 4
    per_row = 2 * h1 * 4 + 2 * tn * mu_b
    tm_cap = max(usable - fixed, per_row * _SUBLANE) // per_row
    tm_cap = max(_SUBLANE, (tm_cap // _SUBLANE) * _SUBLANE)
    tm = min(block_m, tm_cap)
    if n <= tm:
        tm = n                      # single block == full dim (always legal)
    gm = pl.cdiv(n, tm)

    cost = pl.CostEstimate(
        flops=2 * n * h1 * d,
        transcendentals=n * d,
        bytes_accessed=int(n * h1 * 4 + h1 * d * md_b + d * 4 + n * d * mu_b),
    )

    if w_resident:
        grid = (gm,)
        in_specs = [pl.BlockSpec((tm, h1), lambda i: (i, 0)),
                    full(bn1),
                    pl.BlockSpec((h1, d), lambda i: (0, 0)),
                    pl.BlockSpec((1, d), lambda i: (0, 0))]
        out_specs = pl.BlockSpec((tm, d), lambda i: (i, 0))
        dims = ("parallel",)
    else:
        grid = (gm, pl.cdiv(d, tn))
        in_specs = [pl.BlockSpec((tm, h1), lambda i, j: (i, 0)),
                    full(bn1),
                    pl.BlockSpec((h1, tn), lambda i, j: (0, j)),
                    pl.BlockSpec((1, tn), lambda i, j: (0, j))]
        out_specs = pl.BlockSpec((tm, tn), lambda i, j: (i, j))
        dims = ("parallel", "parallel")

    mu = pl.pallas_call(
        _bn_relu_mu_head_kernel,
        out_shape=jax.ShapeDtypeStruct((n, d), mud),
        grid=grid, in_specs=in_specs, out_specs=out_specs,
        compiler_params=cparams(dims),
        cost_estimate=cost,
    )(h1_pre, bn1, w_mu, b_mu)

    # ---- dec_var: batch-independent -> plain JAX ---------------------------
    var = jnp.exp(jnp.clip(params["dec_var"].astype(jnp.float32), -15.0, 15.0))
    return mu, var


# ----------------------------------------------------------------------------
# Parameter init + pure-JAX reference
# ----------------------------------------------------------------------------
def init_params(key, input_dim, hidden_dims, output_dim):
    """Deterministic synthetic parameter init (not a checkpoint load)."""
    ks = jax.random.split(key, 8)
    h0, h1 = hidden_dims
    scale = lambda fan_in: 1.0 / jnp.sqrt(jnp.float32(fan_in))
    return {
        # weights stored as (in, out) == transposed from PyTorch
        "w0": jax.random.normal(ks[0], (input_dim, h0), jnp.float32) * scale(input_dim),
        "b0": jax.random.normal(ks[1], (1, h0), jnp.float32) * 0.01,
        "gamma0": jnp.ones((1, h0), jnp.float32),
        "beta0": jnp.zeros((1, h0), jnp.float32),
        "w1": jax.random.normal(ks[2], (h0, h1), jnp.float32) * scale(h0),
        "b1": jax.random.normal(ks[3], (1, h1), jnp.float32) * 0.01,
        "gamma1": jnp.ones((1, h1), jnp.float32),
        "beta1": jnp.zeros((1, h1), jnp.float32),
        "w_mu": jax.random.normal(ks[4], (h1, output_dim), jnp.float32) * scale(h1),
        "b_mu": jax.random.normal(ks[5], (1, output_dim), jnp.float32) * 0.01,
        "dec_var": jax.random.normal(ks[6], (1, output_dim), jnp.float32),
    }


def reference_forward(x, params, matmul_dtype=jnp.float32):
    """Pure-JAX reference of the PyTorch semantics, at matched matmul precision."""
    md = jnp.dtype(matmul_dtype)

    def mm(a, b):
        return jnp.dot(a.astype(md), b.astype(md),
                       preferred_element_type=jnp.float32)

    def block(h, w, b, g, be):
        h = mm(h, w) + b
        mean = jnp.mean(h, axis=0, keepdims=True)
        var = jnp.mean((h - mean) ** 2, axis=0, keepdims=True)
        h = (h - mean) * jax.lax.rsqrt(var + BN_EPS) * g + be
        return jnp.maximum(h, 0.0)

    h = block(x, params["w0"], params["b0"], params["gamma0"], params["beta0"])
    h = block(h, params["w1"], params["b1"], params["gamma1"], params["beta1"])
    mu = jnp.clip(jnp.exp(mm(h, params["w_mu"]) + params["b_mu"]), 1e-5, 1e6)
    var = jnp.exp(jnp.clip(params["dec_var"], -15.0, 15.0))
    return mu, var


# ----------------------------------------------------------------------------
if __name__ == "__main__":
    key = jax.random.PRNGKey(0)
    k_x, k_p, k_x2 = jax.random.split(key, 3)

    input_dim, hidden_dims, output_dim = 32, [64, 128], 200
    params = init_params(k_p, input_dim, hidden_dims, output_dim)

    # Small batch: single (un-ragged) block for every stage.
    x = jax.random.normal(k_x, (12, input_dim), jnp.float32)

    # 1) float32 matmuls: faithful to the PyTorch(f32) module.
    mu32, var32 = dense_decoder_forward(x, params, matmul_dtype=jnp.float32)
    mu32 = jax.block_until_ready(mu32)
    var32 = jax.block_until_ready(var32)
    mu_ref, var_ref = reference_forward(x, params, matmul_dtype=jnp.float32)
    assert mu32.shape == (12, output_dim) and var32.shape == (1, output_dim)
    assert jnp.allclose(mu32, mu_ref, rtol=1e-4, atol=1e-4)
    assert jnp.allclose(var32, var_ref, rtol=1e-5, atol=1e-5)

    # 2) bf16 MXU operands (fast path), f32 accumulation / f32 mu output.
    mu16, var16 = dense_decoder_forward(x, params, matmul_dtype=jnp.bfloat16)
    mu16 = jax.block_until_ready(mu16)
    mu16_ref, _ = reference_forward(x, params, matmul_dtype=jnp.bfloat16)
    assert jnp.allclose(mu16, mu16_ref, rtol=5e-3, atol=5e-3)
    assert jnp.allclose(var16, var_ref, rtol=1e-5, atol=1e-5)

    # 3) bf16 mu output: halves the dominant HBM write of the head.
    mu16o, _ = dense_decoder_forward(x, params, matmul_dtype=jnp.bfloat16,
                                     mu_dtype=jnp.bfloat16)
    mu16o = jax.block_until_ready(mu16o)
    assert mu16o.dtype == jnp.bfloat16
    assert jnp.allclose(mu16o.astype(jnp.float32), mu16_ref, rtol=2e-2, atol=2e-2)

    # 4) Larger batch: exercises the pad-free cdiv grids with ragged (masked)
    #    last tiles in both the stage-1 stats passes and the head.
    x2 = jax.random.normal(k_x2, (600, input_dim), jnp.float32)
    mu_l, _ = dense_decoder_forward(x2, params, matmul_dtype=jnp.float32)
    mu_l = jax.block_until_ready(mu_l)
    mu_l_ref, _ = reference_forward(x2, params, matmul_dtype=jnp.float32)
    assert mu_l.shape == (600, output_dim)
    assert jnp.allclose(mu_l, mu_l_ref, rtol=1e-4, atol=1e-4)

    print("KERNEL_OK")
</pallas_src>

<mosaic_0001>
module attributes {stable_mosaic.version = 11 : i64} {
  func.func @_linear_stats_kernel(%arg0: i32, %arg1: memref<12x32xf32, #tpu.memory_space<vmem>>, %arg2: memref<32x64xf32, #tpu.memory_space<vmem>>, %arg3: memref<1x64xf32, #tpu.memory_space<vmem>>, %arg4: memref<12x64xf32, #tpu.memory_space<vmem>>, %arg5: memref<1x2x64xf32, #tpu.memory_space<vmem>>) attributes {dimension_semantics = [#tpu.dimension_semantics<parallel>], iteration_bounds = array<i64: 1>, scalar_prefetch = 0 : i64, scratch_operands = 0 : i64, tpu.core_type = #tpu.core_type<tc>, window_params = [{transform_indices = @transform_0, window_bounds = array<i64: 12, 32>}, {pipeline_mode = #tpu.pipeline_mode<synchronous>, transform_indices = @transform_1, window_bounds = array<i64: 32, 64>}, {pipeline_mode = #tpu.pipeline_mode<synchronous>, transform_indices = @transform_2, window_bounds = array<i64: 1, 64>}, {transform_indices = @transform_3, window_bounds = array<i64: 12, 64>}, {transform_indices = @transform_4, window_bounds = array<i64: 1, 2, 64>}]} {
    %c0 = arith.constant 0 : index
    %c0_0 = arith.constant 0 : index
    %0 = vector.load %arg1[%c0, %c0_0] : memref<12x32xf32, #tpu.memory_space<vmem>>, vector<12x32xf32>
    %c0_1 = arith.constant 0 : index
    %c0_2 = arith.constant 0 : index
    %1 = vector.load %arg2[%c0_1, %c0_2] : memref<32x64xf32, #tpu.memory_space<vmem>>, vector<32x64xf32>
    %cst = arith.constant dense<0.000000e+00> : vector<12x64xf32>
    %2 = tpu.matmul %0, %1, %cst {dimension_numbers = #tpu.dot_dimension_numbers<[1], [0], [0], [1], [0, 0, 1, 1], [], []>} : vector<12x32xf32>, vector<32x64xf32>, vector<12x64xf32> -> vector<12x64xf32>
    %c0_3 = arith.constant 0 : index
    %c0_4 = arith.constant 0 : index
    %3 = vector.load %arg3[%c0_3, %c0_4] : memref<1x64xf32, #tpu.memory_space<vmem>>, vector<1x64xf32>
    %4 = vector.broadcast %3 : vector<1x64xf32> to vector<12x64xf32>
    %5 = arith.addf %2, %4 : vector<12x64xf32>
    %c0_5 = arith.constant 0 : index
    %c0_6 = arith.constant 0 : index
    %6 = vector.load %arg4[%c0_5, %c0_6] : memref<12x64xf32, #tpu.memory_space<vmem>>, vector<12x64xf32>
    tpu.vector_store %arg4[%c0_5, %c0_6], %5 {strides = array<i32>} : memref<12x64xf32, #tpu.memory_space<vmem>>, vector<12x64xf32>,
    %7 = tpu.iota {dimensions = array<i32: 0>} : vector<12x64xi32>
    %c12_i32 = arith.constant 12 : i32
    %8 = arith.muli %arg0, %c12_i32 : i32
    %9 = vector.broadcast %8 : i32 to vector<12x64xi32>
    %10 = arith.addi %7, %9 : vector<12x64xi32>
    %c12_i32_7 = arith.constant 12 : i32
    %11 = vector.broadcast %c12_i32_7 : i32 to vector<12x64xi32>
    %12 = arith.cmpi slt, %10, %11 : vector<12x64xi32>
    %cst_8 = arith.constant 0.000000e+00 : f32
    %13 = vector.broadcast %cst_8 : f32 to vector<12x64xf32>
    %14 = arith.select %12, %5, %13 : vector<12x64xi1>, vector<12x64xf32>
    %cst_9 = arith.constant dense<0.000000e+00> : vector<64xf32>
    %15 = vector.multi_reduction <add>, %14, %cst_9 [0] : vector<12x64xf32> to vector<64xf32>
    %16 = vector.shape_cast %15 : vector<64xf32> to vector<1x64xf32>
    %17 = arith.mulf %14, %14 : vector<12x64xf32>
    %cst_10 = arith.constant dense<0.000000e+00> : vector<64xf32>
    %18 = vector.multi_reduction <add>, %17, %cst_10 [0] : vector<12x64xf32> to vector<64xf32>
    %19 = vector.shape_cast %18 : vector<64xf32> to vector<1x64xf32>
    %20 = tpu.concatenate %16, %19 in 0 : vector<1x64xf32>, vector<1x64xf32> -> vector<2x64xf32>
    %21 = vector.shape_cast %20 : vector<2x64xf32> to vector<1x2x64xf32>
    %c0_11 = arith.constant 0 : index
    %c0_12 = arith.constant 0 : index
    %c0_13 = arith.constant 0 : index
    %22 = vector.load %arg5[%c0_11, %c0_12, %c0_13] : memref<1x2x64xf32, #tpu.memory_space<vmem>>, vector<1x2x64xf32>
    tpu.vector_store %arg5[%c0_11, %c0_12, %c0_13], %21 {strides = array<i32>} : memref<1x2x64xf32, #tpu.memory_space<vmem>>, vector<1x2x64xf32>,
    return
  }
  func.func @transform_0(%arg0: i32) -> (i32, i32) {
    %c0_i32 = arith.constant 0 : i32
    %c0_i32_0 = arith.constant 0 : i32
    return %arg0, %c0_i32 : i32, i32
  }
  func.func @transform_1(%arg0: i32) -> (i32, i32) {
    %c0_i32 = arith.constant 0 : i32
    %c0_i32_0 = arith.constant 0 : i32
    %c0_i32_1 = arith.constant 0 : i32
    return %c0_i32, %c0_i32_0 : i32, i32
  }
  func.func @transform_2(%arg0: i32) -> (i32, i32) {
    %c0_i32 = arith.constant 0 : i32
    %c0_i32_0 = arith.constant 0 : i32
    %c0_i32_1 = arith.constant 0 : i32
    return %c0_i32, %c0_i32_0 : i32, i32
  }
  func.func @transform_3(%arg0: i32) -> (i32, i32) {
    %c0_i32 = arith.constant 0 : i32
    %c0_i32_0 = arith.constant 0 : i32
    return %arg0, %c0_i32 : i32, i32
  }
  func.func @transform_4(%arg0: i32) -> (i32, i32, i32) {
    %c0_i32 = arith.constant 0 : i32
    %c0_i32_0 = arith.constant 0 : i32
    %c0_i32_1 = arith.constant 0 : i32
    return %arg0, %c0_i32, %c0_i32_0 : i32, i32, i32
  }
}

</mosaic_0001>

<bundles_post_ra>
// kernel: tpu_custom_call.1
= control target key start
LH: loop header
LB: loop body
LE: loop exit
PB: predicated region body
PF: predicated region fallthrough
CT: control target
= control target key end

     0   :  { %10 = vsyncpa [#allocation3], 0  ;;  %s340_s0 = inlined_call_operand.hbm [shape: f32[12,32], index: 0, kind: input, shape index: {}]   ;;  %s341_s1 = inlined_call_operand.hbm [shape: f32[32,64], index: 1, kind: input, shape index: {}]   ;;  %s342_s2 = inlined_call_operand.vmem [shape: f32[1,64], index: 2, kind: input, shape index: {}]   ;;  %s343_s3 = inlined_call_operand.hbm [shape: f32[12,64], index: 3, kind: output, shape index: {0}]   ;;  %s344_s4 = inlined_call_operand.hbm [shape: f32[1,2,64], index: 4, kind: output, shape index: {1}]  }
   0x1   :  { %11 = vsyncpa [#allocation6], 0 }
   0x2   :  { %12 = vsyncpa [#allocation4], 0 }
   0x3   :  { %13 = vsyncpa [#allocation9], 0  ;;  %s18_s17 = sshll.u32 %s340_s0, 4  ;;  %s282_s18 = smov [#allocation2]   ;;  %s19_s17 = int_to_ptr.hbm [resolvable:$true] %s18_s17 }
   0x4   :  { %s20_s19 = sshll.u32 %s282_s18, 4  ;;  %s31_s22 = sshll.u32 %s341_s1, 4  ;;  %s21_s19 = int_to_ptr.vmem [resolvable:$true] %s20_s19  ;;  %s32_s22 = int_to_ptr.hbm [resolvable:$true] %s31_s22 }
   0x5   :  { %s283_s23 = smov 128   ;;  %s284_s24 = smov 8  }
   0x6   :  { %26 = dma.hbm_to_vmem [thread:$0]  %s19_s17, 256, %s21_s19, [#allocation3], %s283_s23, %s283_s23, %s284_s24  }
   0x7   :  { %s285_s25 = smov [#allocation5]  }
   0x8   :  { %s33_s26 = sshll.u32 %s285_s25, 4  ;;  %s34_s26 = int_to_ptr.vmem [resolvable:$true] %s33_s26 }
   0x9   :  { %39 = dma.hbm_to_vmem [thread:$0]  %s32_s22, 512, %s34_s26, [#allocation6], %s283_s23, %s283_s23, %s284_s24  }
   0xa   :  { %274 = dma.done.wait [#allocation3], 256  }
   0xb   :  { %275 = vsyncadd [#allocation3], 4294967040 }
   0xc   :  { %276 = dma.done.wait [#allocation6], 512  }
   0xd   :  { %277 = vsyncadd [#allocation6], 4294966784  ;;  %v55_v0 = vld [vmem:[#allocation5 + $0x18] sm:$0xff]  ;;  %v54_v1 = vld [vmem:[#allocation5 + $0x10] sm:$0xff]  ;;  %vm60_vm0 = vcmask 261120   ;;  %v94_v6 = vlaneseq  ;;  %s286_s27 = smov [#allocation7]  }
   0xe   :  { %167 = vmatpush.msra.mxu1 %v55_v0  ;;  %79 = vmatpush.msra.mxu0 %v55_v0  ;;  %v53_v2 = vld [vmem:[#allocation5 + $0x8] sm:$0xff]  ;;  %v52_v3 = vld [vmem:[#allocation5] sm:$0xff]  ;;  %v51_v4 = vld [vmem:[#allocation2 + $0x8] sm:$0xf]  ;;  %s133_s28 = sshll.u32 %s286_s27, 4  ;;  %s135_s5 = sshll.u32 %s343_s3, 4  ;;  %s134_s28 = int_to_ptr.vmem [resolvable:$true] %s133_s28  ;;  %s136_s5 = int_to_ptr.hbm [resolvable:$true] %s135_s5 }
   0xf   :  { %v50_v5 = vld [vmem:[#allocation2] sm:$0xff]  ;;  %v95_v7 = vshrl.u32 %v94_v6, 7  ;;  %vm92_vm1 = vcmask 519168   ;;  %vm90_vm3 = vcmask 523264   ;;  %s149_s8 = sshll.u32 %s344_s4, 4  ;;  %vm125_vm4 = vcmask 1040384   ;;  %s150_s8 = int_to_ptr.hbm [resolvable:$true] %s149_s8 }
  0x10   :  { %168 = vmatpush.msra.mxu1 %v54_v1  ;;  %80 = vmatpush.msra.mxu0 %v54_v1  ;;  %v177_v9 = vld [vmem:[%s342_s2] ss:$0 sm:$0xff]  ;;  %s287_s2 = smov [#allocation8]   ;;  %vm127_vm5 = vcmask 517120  }
  0x11   :  { %v96_v8 = vadd.s32 8, %v95_v7  ;;  %s147_s3 = sshll.u32 %s287_s2, 4  ;;  %s148_s3 = int_to_ptr.vmem [resolvable:$true] %s147_s3 }
  0x12   :  { %169 = vmatpush.msra.mxu1 %v53_v2  ;;  %81 = vmatpush.msra.mxu0 %v53_v2 }
  0x13   :  { %vm102_vm2 = vcmp.lt.s32.totalorder %v96_v8, 12 }
  0x14   :  { %170 = vmatpush.msra.mxu1 %v52_v3  ;;  %82 = vmatpush.msra.mxu0 %v52_v3 }
  0x15   :  { %166 = vmatmul.msk.f32.vlgmr.msra.gmra.mxu1 %vm60_vm0, %v51_v4  ;;  %165 = vmatmul.msk.f32.vlgmr.msra.gmra.mxu0 %vm60_vm0, %v50_v5 }
  0x92   :  { %v87_v10 = vpop.f32.mrf.mxu1  ;;  %v84_v11 = vpop.f32.mrf.mxu0 }
  0x93   :  { %v88_v12 = vadd.f32 %v177_v9, %v87_v10  ;;  %v85_v13 = vadd.f32 %v177_v9, %v84_v11 }
  0x95   :  { %93 = vst.msk [vmem:[#allocation7 + $0x8] sm:$0xf] %vm92_vm1, %v88_v12  ;;  %v104_v14 = vsel %vm102_vm2, %v88_v12, 0.0  ;;  %v105_v15 = vsel %vm90_vm3, %v85_v13, 0.0  ;;  %v114_v16 = vmul.f32 %v85_v13, %v85_v13 }
  0x96   :  { %v106_v17 = vsel %vm92_vm1, %v104_v14, 0.0  ;;  %v115_v18 = vmul.f32 %v104_v14, %v104_v14  ;;  %91 = vst.msk [vmem:[#allocation7] sm:$0xff] %vm90_vm3, %v85_v13 }
  0x97   :  { %v107_v19 = vadd.f32 %v106_v17, %v105_v15  ;;  %v116_v20 = vsel %vm90_vm3, %v114_v16, 0.0  ;;  %141 = dma.vmem_to_hbm [thread:$0]  %s134_s28, 256, %s136_s5, [#allocation4], %s283_s23, %s283_s23, %s284_s24  }
  0x98   :  { %v117_v21 = vsel %vm92_vm1, %v115_v18, 0.0 }
  0x99   :  { %v108_v22 = vrot.slane %v107_v19, 4  ;;  %v118_v23 = vadd.f32 %v117_v21, %v116_v20 }
  0x9b   :  { %v109_v24 = vadd.f32 %v108_v22, %v107_v19  ;;  %v119_v25 = vrot.slane %v118_v23, 4 }
  0x9d   :  { %v110_v26 = vrot.slane %v109_v24, 2  ;;  %v120_v27 = vadd.f32 %v119_v25, %v118_v23 }
  0x9f   :  { %v111_v28 = vadd.f32 %v110_v26, %v109_v24  ;;  %v121_v29 = vrot.slane %v120_v27, 2 }
  0xa1   :  { %v112_v30 = vrot.slane %v111_v28, 1  ;;  %v122_v31 = vadd.f32 %v121_v29, %v120_v27 }
  0xa3   :  { %v123_v32 = vrot.slane %v122_v31, 1  ;;  %v113_v33 = vadd.f32 %v112_v30, %v111_v28 }
  0xa5   :  { %v124_v34 = vadd.f32 %v123_v32, %v122_v31 }
  0xa7   :  { %v126_v35 = vsel %vm125_vm4, %v113_v33, %v124_v34 }
  0xa8   :  { %128 = vst.msk [vmem:[#allocation8] sm:$0x3] %vm127_vm5, %v126_v35 }
  0xa9   :  { %152 = dma.vmem_to_hbm [thread:$0]  %s148_s3, 32, %s150_s8, [#allocation9]  }
  0xaa   :  { %278 = dma.done.wait [#allocation4], 256  }
  0xab   :  { %279 = vsyncadd [#allocation4], 4294967040 }
  0xac   :  { %280 = dma.done.wait [#allocation9], 32  }
  0xad   :  { %281 = vsyncadd [#allocation9], 4294967264 }
  0xae   :  { %161 = vsyncpa [#allocation3], 1 }
  0xaf   :  { %162 = vsyncpa [#allocation6], 1 }
  0xb0   :  { %163 = vsyncpa [#allocation4], 1 }
  0xb1   :  { %164 = vsyncpa [#allocation9], 1 }

</bundles_post_ra>
